<compile_context>
chip_gen: v7x
topology: tpu7x:2x2x1
jax: 0.10.0
libtpu: 0.0.40
codegen_flags: <defaults>
</compile_context>

<pallas_src>
import jax
import jax.numpy as jnp
from jax.experimental import pallas as pl
from jax.experimental.pallas import tpu as pltpu


def _round_up(x, m):
    return ((x + m - 1) // m) * m


def _vmem_limit_bytes():
    """Per-generation VMEM limit with headroom for compiler scratch / pipelining."""
    try:
        cap = int(pltpu.get_tpu_info().vmem_capacity_bytes)
    except Exception:
        cap = 64 << 20  # conservative (v7x-sized) fallback
    # ~16 MiB headroom: v7x (64 MiB) -> 48 MiB, v5e/v6e (128 MiB) -> 112 MiB
    return max(32 << 20, cap - (16 << 20))


def _select_tb(B, tb_cap):
    """Pick a 128-multiple batch tile minimizing padding; prefer >=2 tiles (megacore)."""
    tb_cap = max(128, (tb_cap // 128) * 128)
    bp128 = _round_up(max(B, 1), 128)
    max_tiles = bp128 // 128
    best_key, best_tb = None, None
    for n in range(1, max_tiles + 1):
        tb = _round_up(-(-bp128 // n), 128)
        if tb > tb_cap:
            continue
        bp = _round_up(B, tb)
        ntiles = bp // tb
        # minimize padded rows; tie-break: prefer >=2 tiles, then larger tiles
        key = (bp, 0 if ntiles >= 2 else 1, -tb)
        if best_key is None or key < best_key:
            best_key, best_tb = key, tb
    return best_tb if best_tb is not None else 128


# ---------------------------------------------------------------------------
# Kernels
# ---------------------------------------------------------------------------
def mlp_kernel_resident(x_ref, w1_ref, b1_ref, w2_ref, b2_ref, out_ref):
    """Both weight matrices VMEM-resident; one batch tile per grid step."""
    h = jnp.dot(x_ref[...], w1_ref[...], preferred_element_type=jnp.float32)
    h = jnp.maximum(h + b1_ref[...], 0.0)
    y = jnp.dot(h.astype(w2_ref.dtype), w2_ref[...],
                preferred_element_type=jnp.float32)
    out_ref[...] = jax.nn.sigmoid(y + b2_ref[...]).astype(out_ref.dtype)


def mlp_kernel_htiled(x_ref, w1_ref, b1_ref, w2_ref, b2_ref, out_ref, acc_ref):
    """Hidden-dimension-tiled accumulator path for weights too big to stay resident."""
    k = pl.program_id(1)

    @pl.when(k == 0)
    def _():
        acc_ref[...] = jnp.zeros_like(acc_ref)

    h = jnp.dot(x_ref[...], w1_ref[...], preferred_element_type=jnp.float32)
    h = jnp.maximum(h + b1_ref[...], 0.0)  # ReLU is per hidden unit -> tile-safe
    acc_ref[...] += jnp.dot(h.astype(w2_ref.dtype), w2_ref[...],
                            preferred_element_type=jnp.float32)

    @pl.when(k == pl.num_programs(1) - 1)
    def _():
        out_ref[...] = jax.nn.sigmoid(acc_ref[...] + b2_ref[...]).astype(out_ref.dtype)


# ---------------------------------------------------------------------------
# Wrappers
# ---------------------------------------------------------------------------
def prepare_params(w1, b1, w2, b2, *, mxu_dtype=jnp.bfloat16):
    """Pad to lane-dense 128 multiples + cast to the MXU dtype ONCE (hoisted
    off the per-call path). Zero padding keeps padded hidden units at
    relu(0)=0 so they contribute nothing."""
    D_in, H = w1.shape
    D_out = w2.shape[1]
    Dp_in, Hp, Dp_out = _round_up(D_in, 128), _round_up(H, 128), _round_up(D_out, 128)

    def _pad2(a, shape, dtype):
        a = a.astype(dtype)
        if a.shape == shape:
            return a
        return jnp.zeros(shape, dtype).at[: a.shape[0], : a.shape[1]].set(a)

    return {
        "w1": _pad2(w1, (Dp_in, Hp), mxu_dtype),
        "b1": _pad2(b1.reshape(1, -1), (1, Hp), jnp.float32),
        "w2": _pad2(w2, (Hp, Dp_out), mxu_dtype),
        "b2": _pad2(b2.reshape(1, -1), (1, Dp_out), jnp.float32),
        "dims": (D_in, H, D_out),
        "mxu_dtype": mxu_dtype,
    }


def mlp_multilabel(x, prepped, *, tb_cap=512, th=None, out_dtype=jnp.float32,
                   force_h_tiled=False):
    """x: (B, D_in) float; prepped: output of prepare_params()."""
    w1p, b1p, w2p, b2p = prepped["w1"], prepped["b1"], prepped["w2"], prepped["b2"]
    D_in, H, D_out = prepped["dims"]
    mxu_dtype = prepped["mxu_dtype"]
    itemsize = jnp.dtype(mxu_dtype).itemsize
    out_itemsize = jnp.dtype(out_dtype).itemsize

    B = x.shape[0]
    assert x.shape[1] == D_in
    Dp_in, Hp = w1p.shape
    Dp_out = w2p.shape[1]

    vmem_limit = _vmem_limit_bytes()

    # Cap TB so the f32 (TB, Hp) hidden intermediate stays within a few MiB
    # (bounds vreg/VMEM pressure, esp. on v7x's 64 MiB).
    h_cap = max(128, ((8 << 20) // (Hp * 4)) // 128 * 128)
    TB = _select_tb(B, min(tb_cap, h_cap))
    Bp = _round_up(B, TB)

    # Pad/cast x (fuses under the caller's jit); skipped when already aligned.
    xq = x.astype(mxu_dtype)
    if (B, D_in) != (Bp, Dp_in):
        xp = jnp.zeros((Bp, Dp_in), mxu_dtype).at[:B, :D_in].set(xq)
    else:
        xp = xq

    weight_bytes = (Dp_in * Hp + Hp * Dp_out) * itemsize
    use_h_tiled = force_h_tiled or (weight_bytes > vmem_limit // 3)

    flops = 2 * Bp * (Dp_in * Hp + Hp * Dp_out)

    if not use_h_tiled:
        # --- weights-resident path ---
        grid = (Bp // TB,)
        bytes_accessed = (Bp * Dp_in * itemsize + weight_bytes + (Hp + Dp_out) * 4
                          + Bp * Dp_out * out_itemsize)
        out = pl.pallas_call(
            mlp_kernel_resident,
            out_shape=jax.ShapeDtypeStruct((Bp, Dp_out), out_dtype),
            grid_spec=pltpu.PrefetchScalarGridSpec(
                num_scalar_prefetch=0,
                grid=grid,
                in_specs=[
                    pl.BlockSpec((TB, Dp_in), lambda i: (i, 0)),  # x: streamed
                    # resident operands: constant index_map -> single buffer
                    pl.BlockSpec((Dp_in, Hp), lambda i: (0, 0),
                                 pipeline_mode=pl.Buffered(1)),
                    pl.BlockSpec((1, Hp), lambda i: (0, 0),
                                 pipeline_mode=pl.Buffered(1)),
                    pl.BlockSpec((Hp, Dp_out), lambda i: (0, 0),
                                 pipeline_mode=pl.Buffered(1)),
                    pl.BlockSpec((1, Dp_out), lambda i: (0, 0),
                                 pipeline_mode=pl.Buffered(1)),
                ],
                out_specs=pl.BlockSpec((TB, Dp_out), lambda i: (i, 0)),
            ),
            compiler_params=pltpu.CompilerParams(
                dimension_semantics=("parallel",),
                vmem_limit_bytes=vmem_limit,
            ),
            cost_estimate=pl.CostEstimate(
                flops=flops,
                transcendentals=Bp * Dp_out,
                bytes_accessed=bytes_accessed,
            ),
        )(xp, w1p, b1p, w2p, b2p)
    else:
        # --- H-tiled accumulator fallback (large weights / small VMEM) ---
        if th is None:
            per_th128 = (Dp_in * 128 + 128 * Dp_out + 128) * itemsize * 2
            th = max(128, ((vmem_limit // 3) // max(per_th128, 1)) * 128)
        tH = min(_round_up(th, 128), Hp)
        while Hp % tH != 0:      # Hp is a 128-multiple, so this terminates at 128
            tH -= 128
        grid = (Bp // TB, Hp // tH)
        bytes_accessed = (Bp * Dp_in * itemsize
                          + weight_bytes * (Bp // TB)
                          + (Hp + Dp_out) * 4
                          + Bp * Dp_out * out_itemsize)
        out = pl.pallas_call(
            mlp_kernel_htiled,
            out_shape=jax.ShapeDtypeStruct((Bp, Dp_out), out_dtype),
            grid_spec=pltpu.PrefetchScalarGridSpec(
                num_scalar_prefetch=0,
                grid=grid,
                in_specs=[
                    pl.BlockSpec((TB, Dp_in), lambda i, k: (i, 0)),   # x tile
                    pl.BlockSpec((Dp_in, tH), lambda i, k: (0, k)),   # w1 H-tile
                    pl.BlockSpec((1, tH), lambda i, k: (0, k)),       # b1 H-tile
                    pl.BlockSpec((tH, Dp_out), lambda i, k: (k, 0)),  # w2 H-tile
                    pl.BlockSpec((1, Dp_out), lambda i, k: (0, 0),
                                 pipeline_mode=pl.Buffered(1)),       # b2 resident
                ],
                out_specs=pl.BlockSpec((TB, Dp_out), lambda i, k: (i, 0)),
                scratch_shapes=[pltpu.VMEM((TB, Dp_out), jnp.float32)],
            ),
            compiler_params=pltpu.CompilerParams(
                dimension_semantics=("parallel", "arbitrary"),
                vmem_limit_bytes=vmem_limit,
            ),
            cost_estimate=pl.CostEstimate(
                flops=flops,
                transcendentals=Bp * Dp_out,
                bytes_accessed=bytes_accessed,
            ),
        )(xp, w1p, b1p, w2p, b2p)

    if (Bp, Dp_out) != (B, D_out):
        out = out[:B, :D_out]
    return out


# ---------------------------------------------------------------------------
# Parameter init + references
# ---------------------------------------------------------------------------
def init_params(key, input_dim, output_dim):
    """Deterministic init mimicking PyTorch Linear default (uniform +/- 1/sqrt(fan_in))."""
    hidden_dim = (input_dim + output_dim) // 2
    k1, k2, k3, k4 = jax.random.split(key, 4)
    lim1 = 1.0 / jnp.sqrt(jnp.float32(input_dim))
    lim2 = 1.0 / jnp.sqrt(jnp.float32(hidden_dim))
    w1 = jax.random.uniform(k1, (input_dim, hidden_dim), jnp.float32, -lim1, lim1)
    b1 = jax.random.uniform(k2, (1, hidden_dim), jnp.float32, -lim1, lim1)
    w2 = jax.random.uniform(k3, (hidden_dim, output_dim), jnp.float32, -lim2, lim2)
    b2 = jax.random.uniform(k4, (1, output_dim), jnp.float32, -lim2, lim2)
    return w1, b1, w2, b2


def reference_f32(x, w1, b1, w2, b2):
    h = jnp.maximum(x @ w1 + b1, 0.0)
    return jax.nn.sigmoid(h @ w2 + b2)


def reference_bf16_mxu(x, w1, b1, w2, b2):
    """Same math as the kernel: bf16 MXU operands, f32 accumulation/epilogue."""
    h = jnp.dot(x.astype(jnp.bfloat16), w1.astype(jnp.bfloat16),
                preferred_element_type=jnp.float32)
    h = jnp.maximum(h + b1, 0.0)
    y = jnp.dot(h.astype(jnp.bfloat16), w2.astype(jnp.bfloat16),
                preferred_element_type=jnp.float32)
    return jax.nn.sigmoid(y + b2)


if __name__ == "__main__":
    key = jax.random.PRNGKey(0)
    kx1, kp1, kx2, kp2 = jax.random.split(key, 4)

    # --- Test 1: small shapes, auto (weights-resident, single-buffered) path ---
    batch, input_dim, output_dim = 8, 64, 16          # hidden = 40
    x = jax.random.normal(kx1, (batch, input_dim), jnp.float32)
    w1, b1, w2, b2 = init_params(kp1, input_dim, output_dim)
    prepped = prepare_params(w1, b1, w2, b2)          # pad/cast hoisted off hot path
    fwd = jax.jit(lambda xx: mlp_multilabel(xx, prepped))
    out = jax.block_until_ready(fwd(x))
    assert out.shape == (batch, output_dim)
    assert jnp.allclose(out, reference_bf16_mxu(x, w1, b1, w2, b2),
                        atol=1e-3, rtol=1e-3), "mismatch vs bf16-MXU reference"
    assert jnp.allclose(out, reference_f32(x, w1, b1, w2, b2),
                        atol=3e-2, rtol=3e-2), "mismatch vs f32 reference"

    # --- Test 2: exercise the H-tiled accumulator path (hidden=170 -> 2 H tiles) ---
    batch2, input_dim2, output_dim2 = 8, 300, 40      # hidden = 170, Hp = 256
    x2 = jax.random.normal(kx2, (batch2, input_dim2), jnp.float32)
    w1b, b1b, w2b, b2b = init_params(kp2, input_dim2, output_dim2)
    prepped2 = prepare_params(w1b, b1b, w2b, b2b)
    fwd2 = jax.jit(lambda xx: mlp_multilabel(xx, prepped2, force_h_tiled=True, th=128))
    out2 = jax.block_until_ready(fwd2(x2))
    assert out2.shape == (batch2, output_dim2)
    assert jnp.allclose(out2, reference_bf16_mxu(x2, w1b, b1b, w2b, b2b),
                        atol=1e-3, rtol=1e-3), "H-tiled mismatch vs bf16-MXU reference"
    assert jnp.allclose(out2, reference_f32(x2, w1b, b1b, w2b, b2b),
                        atol=3e-2, rtol=3e-2), "H-tiled mismatch vs f32 reference"

    print("KERNEL_OK")
</pallas_src>

<mosaic_0001>
module attributes {stable_mosaic.version = 11 : i64} {
  func.func @mlp_kernel_resident(%arg0: i32, %arg1: memref<128x128xbf16, #tpu.memory_space<vmem>>, %arg2: memref<128x128xbf16, #tpu.memory_space<vmem>>, %arg3: memref<1x128xf32, #tpu.memory_space<vmem>>, %arg4: memref<128x128xbf16, #tpu.memory_space<vmem>>, %arg5: memref<1x128xf32, #tpu.memory_space<vmem>>, %arg6: memref<128x128xf32, #tpu.memory_space<vmem>>) attributes {dimension_semantics = [#tpu.dimension_semantics<parallel>], iteration_bounds = array<i64: 1>, scalar_prefetch = 0 : i64, scratch_operands = 0 : i64, tpu.core_type = #tpu.core_type<tc>, window_params = [{transform_indices = @transform_0, window_bounds = array<i64: 128, 128>}, {pipeline_mode = #tpu.pipeline_mode<synchronous>, transform_indices = @transform_1, window_bounds = array<i64: 128, 128>}, {pipeline_mode = #tpu.pipeline_mode<synchronous>, transform_indices = @transform_2, window_bounds = array<i64: 1, 128>}, {pipeline_mode = #tpu.pipeline_mode<synchronous>, transform_indices = @transform_3, window_bounds = array<i64: 128, 128>}, {pipeline_mode = #tpu.pipeline_mode<synchronous>, transform_indices = @transform_4, window_bounds = array<i64: 1, 128>}, {transform_indices = @transform_5, window_bounds = array<i64: 128, 128>}]} {
    %c0 = arith.constant 0 : index
    %c0_0 = arith.constant 0 : index
    %0 = vector.load %arg1[%c0, %c0_0] : memref<128x128xbf16, #tpu.memory_space<vmem>>, vector<128x128xbf16>
    %c0_1 = arith.constant 0 : index
    %c0_2 = arith.constant 0 : index
    %1 = vector.load %arg2[%c0_1, %c0_2] : memref<128x128xbf16, #tpu.memory_space<vmem>>, vector<128x128xbf16>
    %cst = arith.constant dense<0.000000e+00> : vector<128x128xf32>
    %2 = tpu.matmul %0, %1, %cst {dimension_numbers = #tpu.dot_dimension_numbers<[1], [0], [0], [1], [0, 0, 1, 1], [], []>} : vector<128x128xbf16>, vector<128x128xbf16>, vector<128x128xf32> -> vector<128x128xf32>
    %c0_3 = arith.constant 0 : index
    %c0_4 = arith.constant 0 : index
    %3 = vector.load %arg3[%c0_3, %c0_4] : memref<1x128xf32, #tpu.memory_space<vmem>>, vector<1x128xf32>
    %4 = vector.broadcast %3 : vector<1x128xf32> to vector<128x128xf32>
    %5 = arith.addf %2, %4 : vector<128x128xf32>
    %cst_5 = arith.constant 0.000000e+00 : f32
    %6 = vector.broadcast %cst_5 : f32 to vector<128x128xf32>
    %7 = arith.maximumf %5, %6 : vector<128x128xf32>
    %8 = arith.truncf %7 : vector<128x128xf32> to vector<128x128xbf16>
    %c0_6 = arith.constant 0 : index
    %c0_7 = arith.constant 0 : index
    %9 = vector.load %arg4[%c0_6, %c0_7] : memref<128x128xbf16, #tpu.memory_space<vmem>>, vector<128x128xbf16>
    %cst_8 = arith.constant dense<0.000000e+00> : vector<128x128xf32>
    %10 = tpu.matmul %8, %9, %cst_8 {dimension_numbers = #tpu.dot_dimension_numbers<[1], [0], [0], [1], [0, 0, 1, 1], [], []>} : vector<128x128xbf16>, vector<128x128xbf16>, vector<128x128xf32> -> vector<128x128xf32>
    %c0_9 = arith.constant 0 : index
    %c0_10 = arith.constant 0 : index
    %11 = vector.load %arg5[%c0_9, %c0_10] : memref<1x128xf32, #tpu.memory_space<vmem>>, vector<1x128xf32>
    %12 = vector.broadcast %11 : vector<1x128xf32> to vector<128x128xf32>
    %13 = arith.addf %10, %12 : vector<128x128xf32>
    %14 = arith.negf %13 : vector<128x128xf32>
    %15 = math.exp %14 : vector<128x128xf32>
    %cst_11 = arith.constant 1.000000e+00 : f32
    %16 = vector.broadcast %cst_11 : f32 to vector<128x128xf32>
    %17 = arith.addf %16, %15 : vector<128x128xf32>
    %18 = arith.divf %16, %17 : vector<128x128xf32>
    %c0_12 = arith.constant 0 : index
    %c0_13 = arith.constant 0 : index
    %19 = vector.load %arg6[%c0_12, %c0_13] : memref<128x128xf32, #tpu.memory_space<vmem>>, vector<128x128xf32>
    tpu.vector_store %arg6[%c0_12, %c0_13], %18 {strides = array<i32>} : memref<128x128xf32, #tpu.memory_space<vmem>>, vector<128x128xf32>,
    return
  }
  func.func @transform_0(%arg0: i32) -> (i32, i32) {
    %c0_i32 = arith.constant 0 : i32
    %c0_i32_0 = arith.constant 0 : i32
    return %arg0, %c0_i32 : i32, i32
  }
  func.func @transform_1(%arg0: i32) -> (i32, i32) {
    %c0_i32 = arith.constant 0 : i32
    %c0_i32_0 = arith.constant 0 : i32
    %c0_i32_1 = arith.constant 0 : i32
    return %c0_i32, %c0_i32_0 : i32, i32
  }
  func.func @transform_2(%arg0: i32) -> (i32, i32) {
    %c0_i32 = arith.constant 0 : i32
    %c0_i32_0 = arith.constant 0 : i32
    %c0_i32_1 = arith.constant 0 : i32
    return %c0_i32, %c0_i32_0 : i32, i32
  }
  func.func @transform_3(%arg0: i32) -> (i32, i32) {
    %c0_i32 = arith.constant 0 : i32
    %c0_i32_0 = arith.constant 0 : i32
    %c0_i32_1 = arith.constant 0 : i32
    return %c0_i32, %c0_i32_0 : i32, i32
  }
  func.func @transform_4(%arg0: i32) -> (i32, i32) {
    %c0_i32 = arith.constant 0 : i32
    %c0_i32_0 = arith.constant 0 : i32
    %c0_i32_1 = arith.constant 0 : i32
    return %c0_i32, %c0_i32_0 : i32, i32
  }
  func.func @transform_5(%arg0: i32) -> (i32, i32) {
    %c0_i32 = arith.constant 0 : i32
    %c0_i32_0 = arith.constant 0 : i32
    return %arg0, %c0_i32 : i32, i32
  }
}

</mosaic_0001>

<bundles_post_ra>
// kernel: _lambda_.1
= control target key start
LH: loop header
LB: loop body
LE: loop exit
PB: predicated region body
PF: predicated region fallthrough
CT: control target
= control target key end

     0   :  { %10 = vsyncpa [#allocation3], 0  ;;  %s829_s18 = smov [#allocation2]   ;;  %s994_s0 = inlined_call_operand.vmem [shape: bf16[128,128], index: 0, kind: input, shape index: {}]   ;;  %s995_s1 = inlined_call_operand.hbm [shape: bf16[128,128], index: 1, kind: input, shape index: {}]   ;;  %s996_s2 = inlined_call_operand.vmem [shape: f32[1,128], index: 2, kind: input, shape index: {}]   ;;  %s997_s3 = inlined_call_operand.vmem [shape: bf16[128,128], index: 3, kind: input, shape index: {}]   ;;  %s998_s4 = inlined_call_operand.vmem [shape: f32[1,128], index: 4, kind: input, shape index: {}]   ;;  %s999_s5 = inlined_call_operand.vmem [shape: f32[128,128], index: 5, kind: output, shape index: {}]  }
   0x1   :  { %s18_s19 = sshll.u32 %s829_s18, 4  ;;  %s805_s22 = scalar_lea.hbm %s995_s1, 1024  ;;  %s19_s19 = int_to_ptr.vmem [resolvable:$true] %s18_s19 }
   0x2   :  { %p806_p0 = scmp.ne.s32.totalorder %s995_s1, %s805_s22  ;;  %p809_p1 = scmp.lt.u32.totalorder %s805_s22, %s995_s1 }
   0x4   :  { %p811_p2 = pnand %p809_p1, %p806_p0 }
   0x6   :  { %814 = shalt.err (!%p811_p2)
}
   0x7   :  { %s815_s27 = scalar_lea.vmem %s19_s19, 1024  ;;  %p820_p4 = scmp.lt.s32.totalorder %s19_s19, %s19_s19 }
   0x8   :  { %p816_p3 = scmp.ne.s32.totalorder %s19_s19, %s815_s27  ;;  %p821_p5 = scmp.lt.s32.totalorder %s815_s27, %s815_s27 }
   0xa   :  { %p822_p6 = por %p821_p5, %p820_p4 }
   0xc   :  { %p823_p7 = pnand %p822_p6, %p816_p3 }
   0xe   :  { %826 = shalt.err (!%p823_p7)
}
   0xf   :  { %s830_s28 = smov 64   ;;  %s831_s29 = smov 4  }
  0x10   :  { %24 = dma.hbm_to_vmem [thread:$0]  %s995_s1, 1024, %s19_s19, [#allocation3], %s830_s28, %s830_s28, %s831_s29  }
  0x11   :  { %827 = dma.done.wait [#allocation3], 1024  }
  0x12   :  { %828 = vsyncadd [#allocation3], 4294966272  ;;  %v717_v0 = vld [vmem:[#allocation2] sm:$0xff]   ;;  %v718_v1 = vld [vmem:[#allocation2 + $0x8] sm:$0xff]  }
  0x13   :  { %650 = vmatprep.subr.bf16.mxu0 %v717_v0  ;;  %v719_v2 = vld [vmem:[#allocation2 + $0x10] sm:$0xff]   ;;  %v720_v3 = vld [vmem:[#allocation2 + $0x18] sm:$0xff]   ;;  %v725_v4 = vld [vmem:[%s994_s0] sm:$0xff]  }
  0x14   :  { %651 = vmatpush3.bf16.msra.mxu0 %v717_v0  ;;  %666 = vmatprep.mubr.bf16.mxu0 %v725_v4  ;;  %v721_v5 = vld [vmem:[#allocation2 + $0x20] sm:$0xff]   ;;  %v722_v6 = vld [vmem:[#allocation2 + $0x28] sm:$0xff]   ;;  %v723_v9 = vld [vmem:[#allocation2 + $0x30] sm:$0xff]  }
  0x15   :  { %652 = vmatprep.subr.bf16.mxu0 %v718_v1  ;;  %v733_v7 = vld [vmem:[%s997_s3] sm:$0xff]   ;;  %v734_v8 = vld [vmem:[%s997_s3 + $0x8] sm:$0xff]   ;;  %v735_v10 = vld [vmem:[%s997_s3 + $0x10] sm:$0xff]  }
  0x16   :  { %682 = vmatprep.subr.bf16.mxu1 %v733_v7  ;;  %v724_v11 = vld [vmem:[#allocation2 + $0x38] sm:$0xff]   ;;  %v737_v13 = vld [vmem:[%s997_s3 + $0x20] sm:$0xff]   ;;  %v726_v14 = vld [vmem:[%s994_s0 + $0x8] sm:$0xff]  }
  0x17   :  { %683 = vmatpush3.bf16.msra.mxu1 %v733_v7  ;;  %v736_v12 = vld [vmem:[%s997_s3 + $0x18] sm:$0xff]   ;;  %v727_v15 = vld [vmem:[%s994_s0 + $0x10] sm:$0xff]   ;;  %v738_v16 = vld [vmem:[%s997_s3 + $0x28] sm:$0xff]  }
  0x18   :  { %653 = vmatpush3.bf16.msra.mxu0 %v718_v1  ;;  %684 = vmatprep.subr.bf16.mxu1 %v734_v8  ;;  %v728_v17 = vld [vmem:[%s994_s0 + $0x18] sm:$0xff]   ;;  %v729_v18 = vld [vmem:[%s994_s0 + $0x20] sm:$0xff]   ;;  %v730_v19 = vld [vmem:[%s994_s0 + $0x28] sm:$0xff]  }
  0x19   :  { %654 = vmatprep.subr.bf16.mxu0 %v719_v2  ;;  %v731_v20 = vld [vmem:[%s994_s0 + $0x30] sm:$0xff]   ;;  %v732_v21 = vld [vmem:[%s994_s0 + $0x38] sm:$0xff]   ;;  %v576_v24 = vld [vmem:[%s996_s2] ss:$0 sm:$0xff] }
  0x1a   :  { %v739_v22 = vld [vmem:[%s997_s3 + $0x30] sm:$0xff]   ;;  %v740_v23 = vld [vmem:[%s997_s3 + $0x38] sm:$0xff]  }
  0x1b   :  { %685 = vmatpush3.bf16.msra.mxu1 %v734_v8 }
  0x1c   :  { %655 = vmatpush3.bf16.msra.mxu0 %v719_v2  ;;  %686 = vmatprep.subr.bf16.mxu1 %v735_v10 }
  0x1d   :  { %656 = vmatprep.subr.bf16.mxu0 %v720_v3 }
  0x1f   :  { %687 = vmatpush3.bf16.msra.mxu1 %v735_v10 }
  0x20   :  { %657 = vmatpush3.bf16.msra.mxu0 %v720_v3  ;;  %688 = vmatprep.subr.bf16.mxu1 %v736_v12 }
  0x21   :  { %658 = vmatprep.subr.bf16.mxu0 %v721_v5 }
  0x23   :  { %689 = vmatpush3.bf16.msra.mxu1 %v736_v12 }
  0x24   :  { %659 = vmatpush3.bf16.msra.mxu0 %v721_v5  ;;  %690 = vmatprep.subr.bf16.mxu1 %v737_v13 }
  0x25   :  { %660 = vmatprep.subr.bf16.mxu0 %v722_v6 }
  0x27   :  { %691 = vmatpush3.bf16.msra.mxu1 %v737_v13 }
  0x28   :  { %661 = vmatpush3.bf16.msra.mxu0 %v722_v6  ;;  %692 = vmatprep.subr.bf16.mxu1 %v738_v16 }
  0x29   :  { %662 = vmatprep.subr.bf16.mxu0 %v723_v9 }
  0x2b   :  { %693 = vmatpush3.bf16.msra.mxu1 %v738_v16 }
  0x2c   :  { %663 = vmatpush3.bf16.msra.mxu0 %v723_v9  ;;  %694 = vmatprep.subr.bf16.mxu1 %v739_v22 }
  0x2d   :  { %664 = vmatprep.subr.bf16.mxu0 %v724_v11 }
  0x2f   :  { %695 = vmatpush3.bf16.msra.mxu1 %v739_v22 }
  0x30   :  { %665 = vmatpush3.bf16.msra.mxu0 %v724_v11  ;;  %696 = vmatprep.subr.bf16.mxu1 %v740_v23 }
  0x33   :  { %667 = vmatmul.mubr.bf16.vlgmr.msra.gmra.mrb[0].mxu0 %v726_v14  ;;  %697 = vmatpush3.bf16.msra.mxu1 %v740_v23 }
  0x34   :  { %670 = vmatprep.mubr.bf16.mxu0 %v727_v15 }
  0x3b   :  { %671 = vmatmul.mubr.bf16.gmra.mrb[4].mxu0 %v728_v17  ;;  %v928_v17 = vld [vmem:[%s998_s4] ss:$0 sm:$0xff] }
  0x3c   :  { %674 = vmatprep.mubr.bf16.mxu0 %v729_v18 }
  0x43   :  { %675 = vmatmul.mubr.bf16.gmra.mrb[8].mxu0 %v730_v19 }
  0x44   :  { %678 = vmatprep.mubr.bf16.mxu0 %v731_v20 }
  0x4b   :  { %679 = vmatmul.mubr.bf16.gmra.mrb[12].mxu0 %v732_v21 }
 0x106   :  { %v668_v25 = vpop.f32.mrb[0].mxu0 }
 0x107   :  { %v213_v26 = vadd.f32 %v668_v25, %v576_v24  ;;  %v204_v27 = vpop.f32.mrb[1].mxu0 }
 0x108   :  { %v205_v28 = vadd.f32 %v576_v24, %v204_v27  ;;  %v669_v29 = vpop.f32.mrb[2].mxu0 }
 0x109   :  { %v216_v30 = vadd.f32 %v669_v29, %v576_v24  ;;  %v207_v31 = vpop.f32.mrb[3].mxu0  ;;  %v269_v33 = vmax.f32 %v213_v26, 0.0 }
 0x10a   :  { %v208_v32 = vadd.f32 %v576_v24, %v207_v31  ;;  %v267_v35 = vmax.f32 %v205_v28, 0.0 }
 0x10b   :  { %v270_v34 = vmax.f32 %v216_v30, 0.0 }
 0x10c   :  { %v268_v36 = vmax.f32 %v208_v32, 0.0 }
 0x10d   :  { %v284_v37 = vpack.c.bf16 %v270_v34, %v269_v33 }
 0x10e   :  { %v672_v38 = vpop.f32.mrb[4].mxu0  ;;  %v283_v39 = vpack.c.bf16 %v268_v36, %v267_v35 }
 0x10f   :  { %v229_v40 = vadd.f32 %v672_v38, %v576_v24  ;;  %v220_v41 = vpop.f32.mrb[5].mxu0 }
 0x110   :  { %v221_v42 = vadd.f32 %v576_v24, %v220_v41  ;;  %v673_v43 = vpop.f32.mrb[6].mxu0  ;;  %698 = vmatprep.mubr.bf16.mxu1 %v283_v39 }
 0x111   :  { %v232_v44 = vadd.f32 %v673_v43, %v576_v24  ;;  %v223_v45 = vpop.f32.mrb[7].mxu0  ;;  %699 = vmatmul.mubr.bf16.vlgmr.msra.gmra.mrb[0].mxu1 %v284_v37  ;;  %v273_v47 = vmax.f32 %v229_v40, 0.0 }
 0x112   :  { %v224_v46 = vadd.f32 %v576_v24, %v223_v45  ;;  %v271_v49 = vmax.f32 %v221_v42, 0.0 }
 0x113   :  { %v274_v48 = vmax.f32 %v232_v44, 0.0 }
 0x114   :  { %v272_v50 = vmax.f32 %v224_v46, 0.0 }
 0x115   :  { %v286_v51 = vpack.c.bf16 %v274_v48, %v273_v47 }
 0x116   :  { %v285_v52 = vpack.c.bf16 %v272_v50, %v271_v49  ;;  %v676_v53 = vpop.f32.mrb[8].mxu0 }
 0x117   :  { %v245_v54 = vadd.f32 %v676_v53, %v576_v24  ;;  %v236_v55 = vpop.f32.mrb[9].mxu0 }
 0x118   :  { %v237_v56 = vadd.f32 %v576_v24, %v236_v55  ;;  %v677_v57 = vpop.f32.mrb[10].mxu0  ;;  %702 = vmatprep.mubr.bf16.mxu1 %v285_v52 }
 0x119   :  { %v248_v58 = vadd.f32 %v677_v57, %v576_v24  ;;  %v239_v59 = vpop.f32.mrb[11].mxu0  ;;  %703 = vmatmul.mubr.bf16.gmra.mrb[4].mxu1 %v286_v51  ;;  %v277_v61 = vmax.f32 %v245_v54, 0.0 }
 0x11a   :  { %v240_v60 = vadd.f32 %v576_v24, %v239_v59  ;;  %v275_v63 = vmax.f32 %v237_v56, 0.0 }
 0x11b   :  { %v278_v62 = vmax.f32 %v248_v58, 0.0 }
 0x11c   :  { %v276_v0 = vmax.f32 %v240_v60, 0.0 }
 0x11d   :  { %v288_v1 = vpack.c.bf16 %v278_v62, %v277_v61 }
 0x11e   :  { %v287_v2 = vpack.c.bf16 %v276_v0, %v275_v63  ;;  %v680_v3 = vpop.f32.mrb[12].mxu0 }
 0x11f   :  { %v261_v4 = vadd.f32 %v680_v3, %v576_v24  ;;  %v252_v5 = vpop.f32.mrb[13].mxu0 }
 0x120   :  { %v253_v6 = vadd.f32 %v576_v24, %v252_v5  ;;  %v681_v7 = vpop.f32.mrb[14].mxu0  ;;  %706 = vmatprep.mubr.bf16.mxu1 %v287_v2 }
 0x121   :  { %v264_v8 = vadd.f32 %v681_v7, %v576_v24  ;;  %v255_v9 = vpop.f32.mrb[15].mxu0  ;;  %707 = vmatmul.mubr.bf16.gmra.mrb[8].mxu1 %v288_v1  ;;  %v281_v11 = vmax.f32 %v261_v4, 0.0 }
 0x122   :  { %v256_v10 = vadd.f32 %v576_v24, %v255_v9  ;;  %v279_v13 = vmax.f32 %v253_v6, 0.0 }
 0x123   :  { %v282_v12 = vmax.f32 %v264_v8, 0.0 }
 0x124   :  { %v280_v14 = vmax.f32 %v256_v10, 0.0 }
 0x125   :  { %v290_v15 = vpack.c.bf16 %v282_v12, %v281_v11 }
 0x126   :  { %v289_v16 = vpack.c.bf16 %v280_v14, %v279_v13 }
 0x128   :  { %710 = vmatprep.mubr.bf16.mxu1 %v289_v16 }
 0x129   :  { %711 = vmatmul.mubr.bf16.gmra.mrb[12].mxu1 %v290_v15 }
 0x1e4   :  { %v700_v18 = vpop.f32.mrb[0].mxu1 }
 0x1e5   :  { %v405_v19 = vadd.f32 %v700_v18, %v928_v17  ;;  %v396_v20 = vpop.f32.mrb[1].mxu1 }
 0x1e6   :  { %v397_v21 = vadd.f32 %v928_v17, %v396_v20  ;;  %v701_v22 = vpop.f32.mrb[2].mxu1 }
 0x1e7   :  { %v604_v23 = vmul.f32 -1.442695, %v405_v19  ;;  %v408_v24 = vadd.f32 %v701_v22, %v928_v17  ;;  %v399_v25 = vpop.f32.mrb[3].mxu1 }
 0x1e8   :  { %v602_v26 = vmul.f32 -1.442695, %v397_v21  ;;  %v400_v27 = vadd.f32 %v928_v17, %v399_v25 }
 0x1e9   :  { %741 = vpow2.f32 %v604_v23  ;;  %v605_v28 = vmul.f32 -1.442695, %v408_v24 }
 0x1ea   :  { %743 = vpow2.f32 %v602_v26  ;;  %v603_v29 = vmul.f32 -1.442695, %v400_v27 }
 0x1eb   :  { %745 = vpow2.f32 %v605_v28 }
 0x1ec   :  { %747 = vpow2.f32 %v603_v29  ;;  %v704_v30 = vpop.f32.mrb[4].mxu1 }
 0x1ed   :  { %v421_v31 = vadd.f32 %v704_v30, %v928_v17  ;;  %v412_v32 = vpop.f32.mrb[5].mxu1 }
 0x1ee   :  { %v413_v33 = vadd.f32 %v928_v17, %v412_v32  ;;  %v705_v34 = vpop.f32.mrb[6].mxu1 }
 0x1ef   :  { %v608_v35 = vmul.f32 -1.442695, %v421_v31  ;;  %v424_v36 = vadd.f32 %v705_v34, %v928_v17  ;;  %v415_v37 = vpop.f32.mrb[7].mxu1 }
 0x1f0   :  { %v606_v38 = vmul.f32 -1.442695, %v413_v33  ;;  %v416_v39 = vadd.f32 %v928_v17, %v415_v37 }
 0x1f1   :  { %749 = vpow2.f32 %v608_v35  ;;  %v609_v40 = vmul.f32 -1.442695, %v424_v36 }
 0x1f2   :  { %751 = vpow2.f32 %v606_v38  ;;  %v607_v41 = vmul.f32 -1.442695, %v416_v39 }
 0x1f3   :  { %v742_v42 = vpop.eup %741  ;;  %753 = vpow2.f32 %v609_v40 }
 0x1f4   :  { %v744_v43 = vpop.eup %743  ;;  %v509_v44 = vadd.f32 1.0, %v742_v42  ;;  %755 = vpow2.f32 %v607_v41  ;;  %v708_v45 = vpop.f32.mrb[8].mxu1 }
 0x1f5   :  { %v746_v46 = vpop.eup %745  ;;  %v507_v47 = vadd.f32 1.0, %v744_v43  ;;  %v437_v48 = vadd.f32 %v708_v45, %v928_v17  ;;  %v428_v49 = vpop.f32.mrb[9].mxu1 }
 0x1f6   :  { %v748_v50 = vpop.eup %747  ;;  %757 = vrcp.f32 %v509_v44  ;;  %v510_v51 = vadd.f32 1.0, %v746_v46  ;;  %v429_v52 = vadd.f32 %v928_v17, %v428_v49  ;;  %v709_v53 = vpop.f32.mrb[10].mxu1 }
 0x1f7   :  { %759 = vrcp.f32 %v507_v47  ;;  %v508_v54 = vadd.f32 1.0, %v748_v50  ;;  %v612_v55 = vmul.f32 -1.442695, %v437_v48  ;;  %v440_v56 = vadd.f32 %v709_v53, %v928_v17  ;;  %v431_v57 = vpop.f32.mrb[11].mxu1 }
 0x1f8   :  { %761 = vrcp.f32 %v510_v51  ;;  %v610_v58 = vmul.f32 -1.442695, %v429_v52  ;;  %v432_v59 = vadd.f32 %v928_v17, %v431_v57 }
 0x1f9   :  { %763 = vrcp.f32 %v508_v54  ;;  %v613_v60 = vmul.f32 -1.442695, %v440_v56 }
 0x1fa   :  { %765 = vpow2.f32 %v612_v55  ;;  %v611_v61 = vmul.f32 -1.442695, %v432_v59 }
 0x1fb   :  { %v750_v62 = vpop.eup %749  ;;  %767 = vpow2.f32 %v610_v58 }
 0x1fc   :  { %v752_v63 = vpop.eup %751  ;;  %v513_v0 = vadd.f32 1.0, %v750_v62  ;;  %769 = vpow2.f32 %v613_v60  ;;  %v712_v1 = vpop.f32.mrb[12].mxu1 }
 0x1fd   :  { %v754_v2 = vpop.eup %753  ;;  %v511_v3 = vadd.f32 1.0, %v752_v63  ;;  %771 = vpow2.f32 %v611_v61  ;;  %v453_v4 = vadd.f32 %v712_v1, %v928_v17  ;;  %v444_v5 = vpop.f32.mrb[13].mxu1 }
 0x1fe   :  { %v756_v6 = vpop.eup %755  ;;  %773 = vrcp.f32 %v513_v0  ;;  %v514_v7 = vadd.f32 1.0, %v754_v2  ;;  %v445_v8 = vadd.f32 %v928_v17, %v444_v5  ;;  %v713_v9 = vpop.f32.mrb[14].mxu1 }
 0x1ff   :  { %775 = vrcp.f32 %v511_v3  ;;  %v512_v10 = vadd.f32 1.0, %v756_v6  ;;  %v616_v11 = vmul.f32 -1.442695, %v453_v4  ;;  %v456_v12 = vadd.f32 %v713_v9, %v928_v17  ;;  %v447_v13 = vpop.f32.mrb[15].mxu1 }
 0x200   :  { %v758_v14 = vpop.eup %757  ;;  %777 = vrcp.f32 %v514_v7  ;;  %v614_v15 = vmul.f32 -1.442695, %v445_v8  ;;  %v448_v16 = vadd.f32 %v928_v17, %v447_v13 }
 0x201   :  { %v760_v18 = vpop.eup %759  ;;  %557 = vst [vmem:[%s999_s5 + $0x10] sm:$0xff] %v758_v14  ;;  %779 = vrcp.f32 %v512_v10  ;;  %v617_v19 = vmul.f32 -1.442695, %v456_v12 }
 0x202   :  { %v762_v20 = vpop.eup %761  ;;  %555 = vst [vmem:[%s999_s5] sm:$0xff] %v760_v18  ;;  %781 = vpow2.f32 %v616_v11  ;;  %v615_v21 = vmul.f32 -1.442695, %v448_v16 }
 0x203   :  { %v764_v22 = vpop.eup %763  ;;  %558 = vst [vmem:[%s999_s5 + $0x18] sm:$0xff] %v762_v20  ;;  %783 = vpow2.f32 %v614_v15 }
 0x204   :  { %v766_v17 = vpop.eup %765  ;;  %556 = vst [vmem:[%s999_s5 + $0x8] sm:$0xff] %v764_v22  ;;  %785 = vpow2.f32 %v617_v19 }
 0x205   :  { %v768_v23 = vpop.eup %767  ;;  %v517_v24 = vadd.f32 1.0, %v766_v17  ;;  %787 = vpow2.f32 %v615_v21 }
 0x206   :  { %v770_v25 = vpop.eup %769  ;;  %v515_v26 = vadd.f32 1.0, %v768_v23 }
 0x207   :  { %v772_v27 = vpop.eup %771  ;;  %789 = vrcp.f32 %v517_v24  ;;  %v518_v28 = vadd.f32 1.0, %v770_v25 }
 0x208   :  { %v774_v29 = vpop.eup %773  ;;  %791 = vrcp.f32 %v515_v26  ;;  %v516_v30 = vadd.f32 1.0, %v772_v27 }
 0x209   :  { %v776_v31 = vpop.eup %775  ;;  %561 = vst [vmem:[%s999_s5 + $0x30] sm:$0xff] %v774_v29  ;;  %793 = vrcp.f32 %v518_v28 }
 0x20a   :  { %v778_v32 = vpop.eup %777  ;;  %559 = vst [vmem:[%s999_s5 + $0x20] sm:$0xff] %v776_v31  ;;  %795 = vrcp.f32 %v516_v30 }
 0x20b   :  { %v780_v33 = vpop.eup %779  ;;  %562 = vst [vmem:[%s999_s5 + $0x38] sm:$0xff] %v778_v32 }
 0x20c   :  { %v782_v34 = vpop.eup %781  ;;  %560 = vst [vmem:[%s999_s5 + $0x28] sm:$0xff] %v780_v33 }
 0x20d   :  { %v784_v35 = vpop.eup %783  ;;  %v521_v36 = vadd.f32 1.0, %v782_v34 }
 0x20e   :  { %v786_v37 = vpop.eup %785  ;;  %v519_v38 = vadd.f32 1.0, %v784_v35 }
 0x20f   :  { %v788_v39 = vpop.eup %787  ;;  %797 = vrcp.f32 %v521_v36  ;;  %v522_v40 = vadd.f32 1.0, %v786_v37 }
 0x210   :  { %799 = vrcp.f32 %v519_v38  ;;  %v520_v41 = vadd.f32 1.0, %v788_v39 }
 0x211   :  { %v790_v42 = vpop.eup %789  ;;  %801 = vrcp.f32 %v522_v40 }
 0x212   :  { %v792_v43 = vpop.eup %791  ;;  %565 = vst [vmem:[%s999_s5 + $0x50] sm:$0xff] %v790_v42  ;;  %803 = vrcp.f32 %v520_v41 }
 0x213   :  { %v794_v44 = vpop.eup %793  ;;  %563 = vst [vmem:[%s999_s5 + $0x40] sm:$0xff] %v792_v43 }
 0x214   :  { %v796_v45 = vpop.eup %795  ;;  %566 = vst [vmem:[%s999_s5 + $0x58] sm:$0xff] %v794_v44 }
 0x215   :  { %564 = vst [vmem:[%s999_s5 + $0x48] sm:$0xff] %v796_v45 }
 0x219   :  { %v798_v46 = vpop.eup %797 }
 0x21a   :  { %v800_v47 = vpop.eup %799  ;;  %569 = vst [vmem:[%s999_s5 + $0x70] sm:$0xff] %v798_v46 }
 0x21b   :  { %v802_v48 = vpop.eup %801  ;;  %567 = vst [vmem:[%s999_s5 + $0x60] sm:$0xff] %v800_v47 }
 0x21c   :  { %v804_v49 = vpop.eup %803  ;;  %570 = vst [vmem:[%s999_s5 + $0x78] sm:$0xff] %v802_v48 }
 0x21d   :  { %568 = vst [vmem:[%s999_s5 + $0x68] sm:$0xff] %v804_v49 }
 0x21e   :  { %575 = vsyncpa [#allocation3], 1 }

</bundles_post_ra>
